<compile_context>
chip_gen: v7x
topology: tpu7x:2x2x1
jax: 0.10.0
libtpu: 0.0.40
codegen_flags: <defaults>
</compile_context>

<pallas_src>
import math
import functools

import jax
import jax.numpy as jnp
from jax import lax
from jax.experimental import pallas as pl
from jax.experimental.pallas import tpu as pltpu


def _mha_kernel(q_ref, k_ref, v_ref,
                wqkv_ref, bqkv_ref, wo_ref, bo_ref,
                out_ref,
                oheads_ref,
                *, num_heads, d_k, d_v):
    # q_ref/k_ref/v_ref : (1, S, d_model) VMEM block for this batch row (f32)
    # wqkv_ref          : (3, d_model, H*d_k) bf16 stacked Wq/Wk/Wv
    # bqkv_ref          : (3, 1, H*d_k) f32 stacked bq/bk/bv
    # wo_ref            : (H*d_v, d_model) bf16 output projection weight
    # bo_ref            : (1, d_model) f32 output projection bias
    # oheads_ref        : (S, H*d_v) bf16 scratch holding all head outputs
    H = num_heads
    scale = jnp.float32(1.0 / math.sqrt(d_k))

    q_in = q_ref[0].astype(jnp.bfloat16)          # (S, d_model)
    k_in = k_ref[0].astype(jnp.bfloat16)
    v_in = v_ref[0].astype(jnp.bfloat16)

    # --- fused all-head input projections: one wide-N matmul per Q/K/V ---
    q_all = (jnp.dot(q_in, wqkv_ref[0], preferred_element_type=jnp.float32)
             + bqkv_ref[0]) * scale               # (S, H*d_k) f32, pre-scaled
    k_all = (jnp.dot(k_in, wqkv_ref[1], preferred_element_type=jnp.float32)
             + bqkv_ref[1])
    v_all = (jnp.dot(v_in, wqkv_ref[2], preferred_element_type=jnp.float32)
             + bqkv_ref[2])

    q_all = q_all.astype(jnp.bfloat16)
    k_all = k_all.astype(jnp.bfloat16)
    v_all = v_all.astype(jnp.bfloat16)

    # --- per-head attention.  Static Python loop: H is a small compile-time
    # constant and static lane offsets avoid dynamic lane-dim slicing (a
    # fori_loop index would force dynamic-offset loads/stores).
    for h in range(H):
        qh = q_all[:, h * d_k:(h + 1) * d_k]      # (S, d_k)
        kh = k_all[:, h * d_k:(h + 1) * d_k]
        vh = v_all[:, h * d_v:(h + 1) * d_v]

        # scores: contract last dims directly (no materialized kh.T)
        scores = lax.dot_general(qh, kh, (((1,), (1,)), ((), ())),
                                 preferred_element_type=jnp.float32)  # (S, S)

        # numerically stable softmax; keep exp in f32 (portable to v5e),
        # divide goes to the EUP slot via approximate reciprocal.
        m = jnp.max(scores, axis=-1, keepdims=True)
        e = jnp.exp(scores - m)
        s = jnp.sum(e, axis=-1, keepdims=True)
        w = (e * pl.reciprocal(s, approx=True)).astype(jnp.bfloat16)

        o_h = jnp.dot(w, vh, preferred_element_type=jnp.float32)      # (S, d_v)
        oheads_ref[:, h * d_v:(h + 1) * d_v] = o_h.astype(jnp.bfloat16)

    # --- single wide-K output projection over all heads ---
    out = (jnp.dot(oheads_ref[...], wo_ref[...],
                   preferred_element_type=jnp.float32) + bo_ref[...])  # (S, d_model)
    out_ref[0] = out.astype(out_ref.dtype)

    # TODO(synk): optional boolean `mask` (masked_fill with -inf before the
    # max-subtract) is not implemented; the PyTorch forward under test uses
    # mask=None.


def multi_head_attention(Q, K, V, params, *, num_heads, d_k, d_v):
    B, S, d_model = Q.shape
    H = num_heads
    # The module's final reshape uses num_heads*d_k, so d_v must equal d_k.
    assert d_k == d_v, "MultiHeadAttention's reshape path requires d_v == d_k"
    wq, bq, wk, bk, wv, bv, wo, bo = params

    # One-time host-side layout/dtype plumbing:
    #  * stack Q/K/V projection weights and biases -> 7 kernel refs, not 11
    #  * store MXU weight operands in bf16 (halves HBM/VMEM weight traffic)
    wqkv = jnp.stack([wq, wk, wv]).astype(jnp.bfloat16)   # (3, d_model, H*d_k)
    bqkv = jnp.stack([bq, bk, bv]).astype(jnp.float32)    # (3, 1, H*d_k)
    wo_b = wo.astype(jnp.bfloat16)                        # (H*d_v, d_model)
    bo_f = bo.astype(jnp.float32)                         # (1, d_model)

    kernel = functools.partial(_mha_kernel, num_heads=H, d_k=d_k, d_v=d_v)

    batch_map = lambda b: (b, 0, 0)
    const3 = lambda b: (0, 0, 0)
    const2 = lambda b: (0, 0)

    in_specs = [
        pl.BlockSpec((1, S, d_model), batch_map),          # Q
        pl.BlockSpec((1, S, d_model), batch_map),          # K
        pl.BlockSpec((1, S, d_model), batch_map),          # V
        pl.BlockSpec((3, d_model, H * d_k), const3),       # stacked Wq/Wk/Wv
        pl.BlockSpec((3, 1, H * d_k), const3),             # stacked bq/bk/bv
        pl.BlockSpec((H * d_v, d_model), const2),          # Wo
        pl.BlockSpec((1, d_model), const2),                # bo
    ]
    out_spec = pl.BlockSpec((1, S, d_model), batch_map)

    # NOTE: at these toy shapes d_model=32 < 128 lanes, so the output block is
    # not lane-dense (masked stores); at production d_model>=128 this
    # disappears without any layout change.
    return pl.pallas_call(
        kernel,
        out_shape=jax.ShapeDtypeStruct((B, S, d_model), Q.dtype),
        grid_spec=pltpu.PrefetchScalarGridSpec(
            num_scalar_prefetch=0,
            grid=(B,),                                    # one step per batch row
            in_specs=in_specs,
            out_specs=out_spec,
            scratch_shapes=[pltpu.VMEM((S, H * d_v), jnp.bfloat16)],
        ),
        compiler_params=pltpu.CompilerParams(
            dimension_semantics=("parallel",),
            # Explicit scoped-VMEM budget; revisit when scaling block sizes.
            vmem_limit_bytes=32 * 1024 * 1024),
    )(Q, K, V, wqkv, bqkv, wo_b, bo_f)


def reference_mha(Q, K, V, params, *, num_heads, d_k, d_v):
    """Plain-JAX f32 reference mirroring the PyTorch forward pass."""
    B, S, d_model = Q.shape
    wq, bq, wk, bk, wv, bv, wo, bo = params
    qp = (Q @ wq + bq[0]).reshape(B, S, num_heads, d_k).transpose(0, 2, 1, 3)
    kp = (K @ wk + bk[0]).reshape(B, S, num_heads, d_k).transpose(0, 2, 1, 3)
    vp = (V @ wv + bv[0]).reshape(B, S, num_heads, d_v).transpose(0, 2, 1, 3)
    scores = jnp.einsum('bhqd,bhkd->bhqk', qp, kp) / jnp.sqrt(jnp.float32(d_k))
    w = jax.nn.softmax(scores, axis=-1)
    o = jnp.einsum('bhqk,bhkd->bhqd', w, vp)
    o = o.transpose(0, 2, 1, 3).reshape(B, S, num_heads * d_v)
    return o @ wo + bo[0]


if __name__ == "__main__":
    # Small shapes consistent with the module's forward pass.
    batch_size = 2
    seq_len = 8
    d_model = 32
    num_heads = 4
    d_k = 8
    d_v = 8   # module's final reshape uses num_heads*d_k, so d_v == d_k

    key = jax.random.PRNGKey(0)
    ks = jax.random.split(key, 11)

    def uinit(k, shape, fan_in):
        bound = 1.0 / math.sqrt(fan_in)
        return jax.random.uniform(k, shape, jnp.float32, -bound, bound)

    # Deterministic parameter init (shapes match nn.Linear; stored as (in, out)).
    wq = uinit(ks[0], (d_model, num_heads * d_k), d_model)
    bq = uinit(ks[1], (1, num_heads * d_k), d_model)
    wk = uinit(ks[2], (d_model, num_heads * d_k), d_model)
    bk = uinit(ks[3], (1, num_heads * d_k), d_model)
    wv = uinit(ks[4], (d_model, num_heads * d_v), d_model)
    bv = uinit(ks[5], (1, num_heads * d_v), d_model)
    wo = uinit(ks[6], (num_heads * d_v, d_model), num_heads * d_v)
    bo = uinit(ks[7], (1, d_model), num_heads * d_v)
    params = (wq, bq, wk, bk, wv, bv, wo, bo)

    Q = jax.random.normal(ks[8], (batch_size, seq_len, d_model), jnp.float32)
    K = jax.random.normal(ks[9], (batch_size, seq_len, d_model), jnp.float32)
    V = jax.random.normal(ks[10], (batch_size, seq_len, d_model), jnp.float32)

    out = multi_head_attention(Q, K, V, params,
                               num_heads=num_heads, d_k=d_k, d_v=d_v)
    out = jax.block_until_ready(out)

    ref = reference_mha(Q, K, V, params,
                        num_heads=num_heads, d_k=d_k, d_v=d_v)
    assert out.shape == (batch_size, seq_len, d_model)
    # Tolerance accounts for bf16 MXU operands and the EUP approximate
    # reciprocal in the softmax denominator (f32 reference).
    assert jnp.allclose(out, ref, atol=5e-2, rtol=5e-2), "mismatch vs reference"

    print("KERNEL_OK")
</pallas_src>

<mosaic_0001>
module attributes {stable_mosaic.version = 11 : i64} {
  func.func @_mha_kernel(%arg0: i32, %arg1: memref<1x8x32xf32, #tpu.memory_space<vmem>>, %arg2: memref<1x8x32xf32, #tpu.memory_space<vmem>>, %arg3: memref<1x8x32xf32, #tpu.memory_space<vmem>>, %arg4: memref<3x32x32xbf16, #tpu.memory_space<vmem>>, %arg5: memref<3x1x32xf32, #tpu.memory_space<vmem>>, %arg6: memref<32x32xbf16, #tpu.memory_space<vmem>>, %arg7: memref<1x32xf32, #tpu.memory_space<vmem>>, %arg8: memref<1x8x32xf32, #tpu.memory_space<vmem>>, %arg9: memref<8x32xbf16, #tpu.memory_space<vmem>>) attributes {dimension_semantics = [#tpu.dimension_semantics<parallel>], iteration_bounds = array<i64: 2>, scalar_prefetch = 0 : i64, scratch_operands = 1 : i64, tpu.core_type = #tpu.core_type<tc>, window_params = [{transform_indices = @transform_0, window_bounds = array<i64: 1, 8, 32>}, {transform_indices = @transform_1, window_bounds = array<i64: 1, 8, 32>}, {transform_indices = @transform_2, window_bounds = array<i64: 1, 8, 32>}, {pipeline_mode = #tpu.pipeline_mode<synchronous>, transform_indices = @transform_3, window_bounds = array<i64: 3, 32, 32>}, {pipeline_mode = #tpu.pipeline_mode<synchronous>, transform_indices = @transform_4, window_bounds = array<i64: 3, 1, 32>}, {pipeline_mode = #tpu.pipeline_mode<synchronous>, transform_indices = @transform_5, window_bounds = array<i64: 32, 32>}, {pipeline_mode = #tpu.pipeline_mode<synchronous>, transform_indices = @transform_6, window_bounds = array<i64: 1, 32>}, {transform_indices = @transform_7, window_bounds = array<i64: 1, 8, 32>}]} {
    %c0 = arith.constant 0 : index
    %c0_0 = arith.constant 0 : index
    %c0_1 = arith.constant 0 : index
    %0 = vector.load %arg1[%c0, %c0_0, %c0_1] : memref<1x8x32xf32, #tpu.memory_space<vmem>>, vector<1x8x32xf32>
    %1 = vector.shape_cast %0 : vector<1x8x32xf32> to vector<8x32xf32>
    %2 = arith.truncf %1 : vector<8x32xf32> to vector<8x32xbf16>
    %c0_2 = arith.constant 0 : index
    %c0_3 = arith.constant 0 : index
    %c0_4 = arith.constant 0 : index
    %3 = vector.load %arg2[%c0_2, %c0_3, %c0_4] : memref<1x8x32xf32, #tpu.memory_space<vmem>>, vector<1x8x32xf32>
    %4 = vector.shape_cast %3 : vector<1x8x32xf32> to vector<8x32xf32>
    %5 = arith.truncf %4 : vector<8x32xf32> to vector<8x32xbf16>
    %c0_5 = arith.constant 0 : index
    %c0_6 = arith.constant 0 : index
    %c0_7 = arith.constant 0 : index
    %6 = vector.load %arg3[%c0_5, %c0_6, %c0_7] : memref<1x8x32xf32, #tpu.memory_space<vmem>>, vector<1x8x32xf32>
    %7 = vector.shape_cast %6 : vector<1x8x32xf32> to vector<8x32xf32>
    %8 = arith.truncf %7 : vector<8x32xf32> to vector<8x32xbf16>
    %c0_8 = arith.constant 0 : index
    %c0_9 = arith.constant 0 : index
    %c0_10 = arith.constant 0 : index
    %9 = vector.load %arg4[%c0_8, %c0_9, %c0_10] : memref<3x32x32xbf16, #tpu.memory_space<vmem>>, vector<1x32x32xbf16>
    %10 = vector.shape_cast %9 : vector<1x32x32xbf16> to vector<32x32xbf16>
    %cst = arith.constant dense<0.000000e+00> : vector<8x32xf32>
    %11 = tpu.matmul %2, %10, %cst {dimension_numbers = #tpu.dot_dimension_numbers<[1], [0], [0], [1], [0, 0, 1, 1], [], []>} : vector<8x32xbf16>, vector<32x32xbf16>, vector<8x32xf32> -> vector<8x32xf32>
    %c0_11 = arith.constant 0 : index
    %c0_12 = arith.constant 0 : index
    %c0_13 = arith.constant 0 : index
    %12 = vector.load %arg5[%c0_11, %c0_12, %c0_13] : memref<3x1x32xf32, #tpu.memory_space<vmem>>, vector<1x1x32xf32>
    %13 = vector.shape_cast %12 : vector<1x1x32xf32> to vector<1x32xf32>
    %14 = vector.broadcast %13 : vector<1x32xf32> to vector<8x32xf32>
    %15 = arith.addf %11, %14 : vector<8x32xf32>
    %cst_14 = arith.constant 0.353553385 : f32
    %16 = vector.broadcast %cst_14 : f32 to vector<8x32xf32>
    %17 = arith.mulf %15, %16 : vector<8x32xf32>
    %c1 = arith.constant 1 : index
    %c0_15 = arith.constant 0 : index
    %c0_16 = arith.constant 0 : index
    %18 = vector.load %arg4[%c1, %c0_15, %c0_16] : memref<3x32x32xbf16, #tpu.memory_space<vmem>>, vector<1x32x32xbf16>
    %19 = vector.shape_cast %18 : vector<1x32x32xbf16> to vector<32x32xbf16>
    %cst_17 = arith.constant dense<0.000000e+00> : vector<8x32xf32>
    %20 = tpu.matmul %5, %19, %cst_17 {dimension_numbers = #tpu.dot_dimension_numbers<[1], [0], [0], [1], [0, 0, 1, 1], [], []>} : vector<8x32xbf16>, vector<32x32xbf16>, vector<8x32xf32> -> vector<8x32xf32>
    %c1_18 = arith.constant 1 : index
    %c0_19 = arith.constant 0 : index
    %c0_20 = arith.constant 0 : index
    %21 = vector.load %arg5[%c1_18, %c0_19, %c0_20] : memref<3x1x32xf32, #tpu.memory_space<vmem>>, vector<1x1x32xf32>
    %22 = vector.shape_cast %21 : vector<1x1x32xf32> to vector<1x32xf32>
    %23 = vector.broadcast %22 : vector<1x32xf32> to vector<8x32xf32>
    %24 = arith.addf %20, %23 : vector<8x32xf32>
    %c2 = arith.constant 2 : index
    %c0_21 = arith.constant 0 : index
    %c0_22 = arith.constant 0 : index
    %25 = vector.load %arg4[%c2, %c0_21, %c0_22] : memref<3x32x32xbf16, #tpu.memory_space<vmem>>, vector<1x32x32xbf16>
    %26 = vector.shape_cast %25 : vector<1x32x32xbf16> to vector<32x32xbf16>
    %cst_23 = arith.constant dense<0.000000e+00> : vector<8x32xf32>
    %27 = tpu.matmul %8, %26, %cst_23 {dimension_numbers = #tpu.dot_dimension_numbers<[1], [0], [0], [1], [0, 0, 1, 1], [], []>} : vector<8x32xbf16>, vector<32x32xbf16>, vector<8x32xf32> -> vector<8x32xf32>
    %c2_24 = arith.constant 2 : index
    %c0_25 = arith.constant 0 : index
    %c0_26 = arith.constant 0 : index
    %28 = vector.load %arg5[%c2_24, %c0_25, %c0_26] : memref<3x1x32xf32, #tpu.memory_space<vmem>>, vector<1x1x32xf32>
    %29 = vector.shape_cast %28 : vector<1x1x32xf32> to vector<1x32xf32>
    %30 = vector.broadcast %29 : vector<1x32xf32> to vector<8x32xf32>
    %31 = arith.addf %27, %30 : vector<8x32xf32>
    %32 = arith.truncf %17 : vector<8x32xf32> to vector<8x32xbf16>
    %33 = arith.truncf %24 : vector<8x32xf32> to vector<8x32xbf16>
    %34 = arith.truncf %31 : vector<8x32xf32> to vector<8x32xbf16>
    %35 = vector.extract_strided_slice %32 {offsets = [0, 0], sizes = [8, 8], strides = [1, 1]} : vector<8x32xbf16> to vector<8x8xbf16>
    %36 = vector.extract_strided_slice %33 {offsets = [0, 0], sizes = [8, 8], strides = [1, 1]} : vector<8x32xbf16> to vector<8x8xbf16>
    %37 = vector.extract_strided_slice %34 {offsets = [0, 0], sizes = [8, 8], strides = [1, 1]} : vector<8x32xbf16> to vector<8x8xbf16>
    %cst_27 = arith.constant dense<0.000000e+00> : vector<8x8xf32>
    %38 = tpu.matmul %35, %36, %cst_27 {dimension_numbers = #tpu.dot_dimension_numbers<[1], [1], [0], [0], [0, 0, 1, 0], [], []>} : vector<8x8xbf16>, vector<8x8xbf16>, vector<8x8xf32> -> vector<8x8xf32>
    %cst_28 = arith.constant dense<0xFF800000> : vector<8xf32>
    %39 = vector.multi_reduction <maximumf>, %38, %cst_28 [1] : vector<8x8xf32> to vector<8xf32>
    %40 = vector.shape_cast %39 : vector<8xf32> to vector<8x1xf32>
    %41 = vector.broadcast %40 : vector<8x1xf32> to vector<8x8xf32>
    %42 = arith.subf %38, %41 : vector<8x8xf32>
    %43 = math.exp %42 : vector<8x8xf32>
    %cst_29 = arith.constant dense<0.000000e+00> : vector<8xf32>
    %44 = vector.multi_reduction <add>, %43, %cst_29 [1] : vector<8x8xf32> to vector<8xf32>
    %45 = vector.shape_cast %44 : vector<8xf32> to vector<8x1xf32>
    %46 = tpu.reciprocal %45 {approx = true} : vector<8x1xf32> -> vector<8x1xf32>
    %47 = vector.broadcast %46 : vector<8x1xf32> to vector<8x8xf32>
    %48 = arith.mulf %43, %47 : vector<8x8xf32>
    %49 = arith.truncf %48 : vector<8x8xf32> to vector<8x8xbf16>
    %cst_30 = arith.constant dense<0.000000e+00> : vector<8x8xf32>
    %50 = tpu.matmul %49, %37, %cst_30 {dimension_numbers = #tpu.dot_dimension_numbers<[1], [0], [0], [1], [0, 0, 1, 1], [], []>} : vector<8x8xbf16>, vector<8x8xbf16>, vector<8x8xf32> -> vector<8x8xf32>
    %51 = arith.truncf %50 : vector<8x8xf32> to vector<8x8xbf16>
    %c0_31 = arith.constant 0 : index
    %c0_32 = arith.constant 0 : index
    %52 = vector.load %arg9[%c0_31, %c0_32] : memref<8x32xbf16, #tpu.memory_space<vmem>>, vector<8x8xbf16>
    tpu.vector_store %arg9[%c0_31, %c0_32], %51 {strides = array<i32>} : memref<8x32xbf16, #tpu.memory_space<vmem>>, vector<8x8xbf16>,
    %53 = vector.extract_strided_slice %32 {offsets = [0, 8], sizes = [8, 8], strides = [1, 1]} : vector<8x32xbf16> to vector<8x8xbf16>
    %54 = vector.extract_strided_slice %33 {offsets = [0, 8], sizes = [8, 8], strides = [1, 1]} : vector<8x32xbf16> to vector<8x8xbf16>
    %55 = vector.extract_strided_slice %34 {offsets = [0, 8], sizes = [8, 8], strides = [1, 1]} : vector<8x32xbf16> to vector<8x8xbf16>
    %cst_33 = arith.constant dense<0.000000e+00> : vector<8x8xf32>
    %56 = tpu.matmul %53, %54, %cst_33 {dimension_numbers = #tpu.dot_dimension_numbers<[1], [1], [0], [0], [0, 0, 1, 0], [], []>} : vector<8x8xbf16>, vector<8x8xbf16>, vector<8x8xf32> -> vector<8x8xf32>
    %cst_34 = arith.constant dense<0xFF800000> : vector<8xf32>
    %57 = vector.multi_reduction <maximumf>, %56, %cst_34 [1] : vector<8x8xf32> to vector<8xf32>
    %58 = vector.shape_cast %57 : vector<8xf32> to vector<8x1xf32>
    %59 = vector.broadcast %58 : vector<8x1xf32> to vector<8x8xf32>
    %60 = arith.subf %56, %59 : vector<8x8xf32>
    %61 = math.exp %60 : vector<8x8xf32>
    %cst_35 = arith.constant dense<0.000000e+00> : vector<8xf32>
    %62 = vector.multi_reduction <add>, %61, %cst_35 [1] : vector<8x8xf32> to vector<8xf32>
    %63 = vector.shape_cast %62 : vector<8xf32> to vector<8x1xf32>
    %64 = tpu.reciprocal %63 {approx = true} : vector<8x1xf32> -> vector<8x1xf32>
    %65 = vector.broadcast %64 : vector<8x1xf32> to vector<8x8xf32>
    %66 = arith.mulf %61, %65 : vector<8x8xf32>
    %67 = arith.truncf %66 : vector<8x8xf32> to vector<8x8xbf16>
    %cst_36 = arith.constant dense<0.000000e+00> : vector<8x8xf32>
    %68 = tpu.matmul %67, %55, %cst_36 {dimension_numbers = #tpu.dot_dimension_numbers<[1], [0], [0], [1], [0, 0, 1, 1], [], []>} : vector<8x8xbf16>, vector<8x8xbf16>, vector<8x8xf32> -> vector<8x8xf32>
    %69 = arith.truncf %68 : vector<8x8xf32> to vector<8x8xbf16>
    %c0_37 = arith.constant 0 : index
    %c8 = arith.constant 8 : index
    %70 = vector.load %arg9[%c0_37, %c8] : memref<8x32xbf16, #tpu.memory_space<vmem>>, vector<8x8xbf16>
    tpu.vector_store %arg9[%c0_37, %c8], %69 {strides = array<i32>} : memref<8x32xbf16, #tpu.memory_space<vmem>>, vector<8x8xbf16>,
    %71 = vector.extract_strided_slice %32 {offsets = [0, 16], sizes = [8, 8], strides = [1, 1]} : vector<8x32xbf16> to vector<8x8xbf16>
    %72 = vector.extract_strided_slice %33 {offsets = [0, 16], sizes = [8, 8], strides = [1, 1]} : vector<8x32xbf16> to vector<8x8xbf16>
    %73 = vector.extract_strided_slice %34 {offsets = [0, 16], sizes = [8, 8], strides = [1, 1]} : vector<8x32xbf16> to vector<8x8xbf16>
    %cst_38 = arith.constant dense<0.000000e+00> : vector<8x8xf32>
    %74 = tpu.matmul %71, %72, %cst_38 {dimension_numbers = #tpu.dot_dimension_numbers<[1], [1], [0], [0], [0, 0, 1, 0], [], []>} : vector<8x8xbf16>, vector<8x8xbf16>, vector<8x8xf32> -> vector<8x8xf32>
    %cst_39 = arith.constant dense<0xFF800000> : vector<8xf32>
    %75 = vector.multi_reduction <maximumf>, %74, %cst_39 [1] : vector<8x8xf32> to vector<8xf32>
    %76 = vector.shape_cast %75 : vector<8xf32> to vector<8x1xf32>
    %77 = vector.broadcast %76 : vector<8x1xf32> to vector<8x8xf32>
    %78 = arith.subf %74, %77 : vector<8x8xf32>
    %79 = math.exp %78 : vector<8x8xf32>
    %cst_40 = arith.constant dense<0.000000e+00> : vector<8xf32>
    %80 = vector.multi_reduction <add>, %79, %cst_40 [1] : vector<8x8xf32> to vector<8xf32>
    %81 = vector.shape_cast %80 : vector<8xf32> to vector<8x1xf32>
    %82 = tpu.reciprocal %81 {approx = true} : vector<8x1xf32> -> vector<8x1xf32>
    %83 = vector.broadcast %82 : vector<8x1xf32> to vector<8x8xf32>
    %84 = arith.mulf %79, %83 : vector<8x8xf32>
    %85 = arith.truncf %84 : vector<8x8xf32> to vector<8x8xbf16>
    %cst_41 = arith.constant dense<0.000000e+00> : vector<8x8xf32>
    %86 = tpu.matmul %85, %73, %cst_41 {dimension_numbers = #tpu.dot_dimension_numbers<[1], [0], [0], [1], [0, 0, 1, 1], [], []>} : vector<8x8xbf16>, vector<8x8xbf16>, vector<8x8xf32> -> vector<8x8xf32>
    %87 = arith.truncf %86 : vector<8x8xf32> to vector<8x8xbf16>
    %c0_42 = arith.constant 0 : index
    %c16 = arith.constant 16 : index
    %88 = vector.load %arg9[%c0_42, %c16] : memref<8x32xbf16, #tpu.memory_space<vmem>>, vector<8x8xbf16>
    tpu.vector_store %arg9[%c0_42, %c16], %87 {strides = array<i32>} : memref<8x32xbf16, #tpu.memory_space<vmem>>, vector<8x8xbf16>,
    %89 = vector.extract_strided_slice %32 {offsets = [0, 24], sizes = [8, 8], strides = [1, 1]} : vector<8x32xbf16> to vector<8x8xbf16>
    %90 = vector.extract_strided_slice %33 {offsets = [0, 24], sizes = [8, 8], strides = [1, 1]} : vector<8x32xbf16> to vector<8x8xbf16>
    %91 = vector.extract_strided_slice %34 {offsets = [0, 24], sizes = [8, 8], strides = [1, 1]} : vector<8x32xbf16> to vector<8x8xbf16>
    %cst_43 = arith.constant dense<0.000000e+00> : vector<8x8xf32>
    %92 = tpu.matmul %89, %90, %cst_43 {dimension_numbers = #tpu.dot_dimension_numbers<[1], [1], [0], [0], [0, 0, 1, 0], [], []>} : vector<8x8xbf16>, vector<8x8xbf16>, vector<8x8xf32> -> vector<8x8xf32>
    %cst_44 = arith.constant dense<0xFF800000> : vector<8xf32>
    %93 = vector.multi_reduction <maximumf>, %92, %cst_44 [1] : vector<8x8xf32> to vector<8xf32>
    %94 = vector.shape_cast %93 : vector<8xf32> to vector<8x1xf32>
    %95 = vector.broadcast %94 : vector<8x1xf32> to vector<8x8xf32>
    %96 = arith.subf %92, %95 : vector<8x8xf32>
    %97 = math.exp %96 : vector<8x8xf32>
    %cst_45 = arith.constant dense<0.000000e+00> : vector<8xf32>
    %98 = vector.multi_reduction <add>, %97, %cst_45 [1] : vector<8x8xf32> to vector<8xf32>
    %99 = vector.shape_cast %98 : vector<8xf32> to vector<8x1xf32>
    %100 = tpu.reciprocal %99 {approx = true} : vector<8x1xf32> -> vector<8x1xf32>
    %101 = vector.broadcast %100 : vector<8x1xf32> to vector<8x8xf32>
    %102 = arith.mulf %97, %101 : vector<8x8xf32>
    %103 = arith.truncf %102 : vector<8x8xf32> to vector<8x8xbf16>
    %cst_46 = arith.constant dense<0.000000e+00> : vector<8x8xf32>
    %104 = tpu.matmul %103, %91, %cst_46 {dimension_numbers = #tpu.dot_dimension_numbers<[1], [0], [0], [1], [0, 0, 1, 1], [], []>} : vector<8x8xbf16>, vector<8x8xbf16>, vector<8x8xf32> -> vector<8x8xf32>
    %105 = arith.truncf %104 : vector<8x8xf32> to vector<8x8xbf16>
    %c0_47 = arith.constant 0 : index
    %c24 = arith.constant 24 : index
    %106 = vector.load %arg9[%c0_47, %c24] : memref<8x32xbf16, #tpu.memory_space<vmem>>, vector<8x8xbf16>
    tpu.vector_store %arg9[%c0_47, %c24], %105 {strides = array<i32>} : memref<8x32xbf16, #tpu.memory_space<vmem>>, vector<8x8xbf16>,
    %c0_48 = arith.constant 0 : index
    %c0_49 = arith.constant 0 : index
    %107 = vector.load %arg9[%c0_48, %c0_49] : memref<8x32xbf16, #tpu.memory_space<vmem>>, vector<8x32xbf16>
    %c0_50 = arith.constant 0 : index
    %c0_51 = arith.constant 0 : index
    %108 = vector.load %arg6[%c0_50, %c0_51] : memref<32x32xbf16, #tpu.memory_space<vmem>>, vector<32x32xbf16>
    %cst_52 = arith.constant dense<0.000000e+00> : vector<8x32xf32>
    %109 = tpu.matmul %107, %108, %cst_52 {dimension_numbers = #tpu.dot_dimension_numbers<[1], [0], [0], [1], [0, 0, 1, 1], [], []>} : vector<8x32xbf16>, vector<32x32xbf16>, vector<8x32xf32> -> vector<8x32xf32>
    %c0_53 = arith.constant 0 : index
    %c0_54 = arith.constant 0 : index
    %110 = vector.load %arg7[%c0_53, %c0_54] : memref<1x32xf32, #tpu.memory_space<vmem>>, vector<1x32xf32>
    %111 = vector.broadcast %110 : vector<1x32xf32> to vector<8x32xf32>
    %112 = arith.addf %109, %111 : vector<8x32xf32>
    %c0_55 = arith.constant 0 : index
    %c0_56 = arith.constant 0 : index
    %c0_57 = arith.constant 0 : index
    %113 = vector.load %arg8[%c0_55, %c0_56, %c0_57] : memref<1x8x32xf32, #tpu.memory_space<vmem>>, vector<1x8x32xf32>
    %114 = vector.shape_cast %113 : vector<1x8x32xf32> to vector<8x32xf32>
    %115 = vector.shape_cast %112 : vector<8x32xf32> to vector<1x8x32xf32>
    tpu.vector_store %arg8[%c0_55, %c0_56, %c0_57], %115 {strides = array<i32>} : memref<1x8x32xf32, #tpu.memory_space<vmem>>, vector<1x8x32xf32>,
    return
  }
  func.func @transform_0(%arg0: i32) -> (i32, i32, i32) {
    %c0_i32 = arith.constant 0 : i32
    %c0_i32_0 = arith.constant 0 : i32
    %c0_i32_1 = arith.constant 0 : i32
    return %arg0, %c0_i32, %c0_i32_0 : i32, i32, i32
  }
  func.func @transform_1(%arg0: i32) -> (i32, i32, i32) {
    %c0_i32 = arith.constant 0 : i32
    %c0_i32_0 = arith.constant 0 : i32
    %c0_i32_1 = arith.constant 0 : i32
    return %arg0, %c0_i32, %c0_i32_0 : i32, i32, i32
  }
  func.func @transform_2(%arg0: i32) -> (i32, i32, i32) {
    %c0_i32 = arith.constant 0 : i32
    %c0_i32_0 = arith.constant 0 : i32
    %c0_i32_1 = arith.constant 0 : i32
    return %arg0, %c0_i32, %c0_i32_0 : i32, i32, i32
  }
  func.func @transform_3(%arg0: i32) -> (i32, i32, i32) {
    %c0_i32 = arith.constant 0 : i32
    %c0_i32_0 = arith.constant 0 : i32
    %c0_i32_1 = arith.constant 0 : i32
    %c0_i32_2 = arith.constant 0 : i32
    return %c0_i32, %c0_i32_0, %c0_i32_1 : i32, i32, i32
  }
  func.func @transform_4(%arg0: i32) -> (i32, i32, i32) {
    %c0_i32 = arith.constant 0 : i32
    %c0_i32_0 = arith.constant 0 : i32
    %c0_i32_1 = arith.constant 0 : i32
    %c0_i32_2 = arith.constant 0 : i32
    return %c0_i32, %c0_i32_0, %c0_i32_1 : i32, i32, i32
  }
  func.func @transform_5(%arg0: i32) -> (i32, i32) {
    %c0_i32 = arith.constant 0 : i32
    %c0_i32_0 = arith.constant 0 : i32
    %c0_i32_1 = arith.constant 0 : i32
    return %c0_i32, %c0_i32_0 : i32, i32
  }
  func.func @transform_6(%arg0: i32) -> (i32, i32) {
    %c0_i32 = arith.constant 0 : i32
    %c0_i32_0 = arith.constant 0 : i32
    %c0_i32_1 = arith.constant 0 : i32
    return %c0_i32, %c0_i32_0 : i32, i32
  }
  func.func @transform_7(%arg0: i32) -> (i32, i32, i32) {
    %c0_i32 = arith.constant 0 : i32
    %c0_i32_0 = arith.constant 0 : i32
    %c0_i32_1 = arith.constant 0 : i32
    return %arg0, %c0_i32, %c0_i32_0 : i32, i32, i32
  }
}

</mosaic_0001>

<bundles_post_ra>
// kernel: tpu_custom_call.1
= control target key start
LH: loop header
LB: loop body
LE: loop exit
PB: predicated region body
PF: predicated region fallthrough
CT: control target
= control target key end

     0   :  { %s2231_s0 = inlined_call_operand.hbm [shape: f32[2,8,32], index: 0, kind: input, shape index: {}]   ;;  %s2232_s1 = inlined_call_operand.hbm [shape: f32[2,8,32], index: 1, kind: input, shape index: {}]   ;;  %s2233_s2 = inlined_call_operand.hbm [shape: f32[2,8,32], index: 2, kind: input, shape index: {}]   ;;  %s2234_s3 = inlined_call_operand.hbm [shape: bf16[3,32,32], index: 3, kind: input, shape index: {}]   ;;  %s2235_s4 = inlined_call_operand.hbm [shape: f32[3,1,32], index: 4, kind: input, shape index: {}]   ;;  %s2236_s5 = inlined_call_operand.vmem [shape: bf16[32,32], index: 5, kind: input, shape index: {}]   ;;  %s2237_s6 = inlined_call_operand.vmem [shape: f32[1,32], index: 6, kind: input, shape index: {}]   ;;  %s2238_s7 = inlined_call_operand.hbm [shape: f32[2,8,32], index: 7, kind: output, shape index: {}]  }
   0x1   :  { %2256 = sst [smem:[#allocation22_spill]] %s2232_s1 }
   0x2   :  { %2257 = sst [smem:[#allocation23_spill]] %s2234_s3 }
   0x3   :  { %12 = vsyncpa [#allocation4], 0 }
   0x4   :  { %14 = vsyncpa [#allocation4 + $0x1], 0 }
   0x5   :  { %15 = vsyncpa [#allocation7], 0 }
   0x6   :  { %17 = vsyncpa [#allocation7 + $0x1], 0 }
   0x7   :  { %18 = vsyncpa [#allocation10], 0 }
   0x8   :  { %19 = vsyncpa [#allocation5], 0 }
   0x9   :  { %21 = vsyncpa [#allocation5 + $0x1], 0  ;;  %s1844_s24 = smov 0   ;;  %s1846_s25 = smov 0  }
   0xa   :  { %s1848_s26 = smov 0   ;;  %s1850_s27 = smov 0  }
   0xb LB: > { %2258 = sst [smem:[#allocation17_spill]] %s1772_s24  ;;  %s1865_s28 = sadd.s32 4294967295, %s1784_s27   ;;  %s1784_s27 = sphi %s1850_s27, %s2290_s27   ;;  %s1780_s26 = sphi %s1848_s26, %s2294_s26   ;;  %s1776_s25 = sphi %s1846_s25, %s2293_s25   ;;  %s1772_s24 = sphi %s1844_s24, %s2292_s24  }
   0xc   : > { %2259 = sst [smem:[#allocation18_spill]] %s1784_s27  ;;  %s1291_s29 = sadd.s32 4294967294, %s1784_s27  }
   0xd   : > { %p47_p0 = scmp.ne.s32.totalorder %s1776_s25, %s1772_s24  ;;  %p2239_p1 = scmp.eq.s32.totalorder %s1865_s28, 0 }
   0xe   : > { %p213_p3 = scmp.eq.s32.totalorder %s1291_s29, 1  ;;  %p1292_p5 = scmp.ge.s32.totalorder %s1784_s27, 1 }
   0xf   : > { %p1874_p4 = por %p2239_p1, %p47_p0  ;;  %p220_p7 = scmp.lt.s32.totalorder %s1784_s27, 3 }
  0x10   : > { %p1879_p6 = por %p213_p3, %p47_p0  ;;  %s1786_s10 = smov [#allocation9]  }
  0x11   : > { %s2260_s30 = scalar_select %p1874_p4, 1, 0 }
  0x12   : > { %s2261_s8 = scalar_select %p1879_p6, 1, 0 }
  0x13   : > { %p1884_p8 = pnand %p1292_p5, %p220_p7  ;;  %s232_s11 = sshll.u32 %s1786_s10, 4  ;;  %s1888_s11 = int_to_ptr.vmem [resolvable:$true] %s232_s11 }
  0x14   : > { %2262 = sst [smem:[#allocation19_spill]] %s2261_s8  ;;  %s1900_s13 = sadd.s32 1, %s1784_s27  }
  0x15   : > { %s2263_s9 = scalar_select %p1884_p8, 1, 0 }
  0x16   : > { %p1467_p9 = pneg %p1884_p8  ;;  %2265 = sst [smem:[#allocation20_spill]] %s1900_s13 }
  0x17   : > { %s34_s14 = sadd.s32 1, %s1780_s26  ;;  %s31_s15 = ssub.s32 %s1784_s27, %s1900_s13 }
  0x18   : > { %p1895_p11 = pnand %p1467_p9, %p2239_p1  ;;  %s2266_s3 = sld [smem:[#allocation23_spill]] }
  0x1a   : > { %s2264_s12 = scalar_select %p1895_p11, 1, 0 }
  0x1b   : > { %p2243_p13 = pneg %p1895_p11 }
  0x1e   : > { %s1564_s18 = scalar_lea.hbm %s2266_s3, 768 }
  0x1f   : > { %p1565_p12 = scmp.ne.s32.totalorder %s2266_s3, %s1564_s18  ;;  %p1571_p5 = scmp.lt.u32.totalorder %s1564_s18, %s2266_s3 }
  0x21   : > { %p1567_p0 = pnand %p2243_p13, %p1565_p12 }
  0x23   : > { %p1568_p3 = pneg %p1567_p0 }
  0x25   : > { %p1573_p7 = pnand %p1571_p5, %p1568_p3 }
  0x27   : > { %1576 = shalt.err (!%p1573_p7)
}
  0x28   : > { %s1577_s23 = scalar_lea.vmem %s1888_s11, 768  ;;  %p1585_p2 = scmp.lt.s32.totalorder %s1888_s11, %s1888_s11 }
  0x29   : > { %p1578_p9 = scmp.ne.s32.totalorder %s1888_s11, %s1577_s23  ;;  %p1586_p12 = scmp.lt.s32.totalorder %s1577_s23, %s1577_s23 }
  0x2b   : > { %p1580_p10 = pnand %p1578_p9, %p2243_p13  ;;  %p1587_p0 = por %p1586_p12, %p1585_p2 }
  0x2d   : > { %p1581_p1 = pneg %p1580_p10 }
  0x2f   : > { %p1588_p6 = pnand %p1587_p0, %p1581_p1 }
  0x31   : > { %1591 = shalt.err (!%p1588_p6)
}
  0x32   : > { %s1787_s29 = smov 64   ;;  %s1788_s10 = smov 4  }
  0x33   : > { %1470 = dma.hbm_to_vmem [thread:$0]  (!%p1895_p11), %s2266_s3, 768, %s1888_s11, [#allocation10], %s1787_s29, %s1787_s29, %s1788_s10  }
  0x34   : > { %p32_p1 = scmp.eq.s32.totalorder %s31_s15, 0  ;;  %p41_p2 = scmp.ne.s32.totalorder %s1780_s26, %s1776_s25 }
  0x35   : > { %p42_p6 = scmp.eq.s32.totalorder %s1784_s27, 0  ;;  %p1490_p10 = scmp.lt.s32.totalorder %s1784_s27, 2 }
  0x36   : > { %s1937_s18 = scalar_select %p32_p1, %s1780_s26, %s34_s14  }
  0x37   : > { %p43_p3 = por %p42_p6, %p41_p2  ;;  %p2268_p5 = scmp.eq.s32.totalorder %s1865_s28, 1 }
  0x38   : > { %2267 = sst [smem:[#allocation21_spill]] %s1937_s18  ;;  %s2240_s20 = sand.u32 1, %s1780_s26  }
  0x39   : > { %p1941_p7 = por %p2268_p5, %p41_p2  ;;  %s1947_s21 = sshll.u32 %s1784_s27, 7 }
  0x3a   : > { %s1951_s22 = sshll.u32 %s2240_s20, 3  ;;  %p1953_p9 = pnand %p1490_p10, %p43_p3 }
  0x3b   : > { %s2269_s19 = scalar_select %p1941_p7, 1, 0 }
  0x3c   : > { %s2270_s11 = scalar_select %p1953_p9, 1, 0 }
  0x3d   : > { %s283_s14 = sand.u32 1, %s1784_s27   ;;  %s2271_s1 = sld [smem:[#allocation22_spill]] }
  0x3e   : > { %s287_s10 = scalar_lea.vmem [#allocation6], %s1951_s22  ;;  %s1967_s17 = scalar_lea.sflag [#allocation7], %s283_s14 }
  0x3f   : > { %s294_s16 = sshll.u32 %s287_s10, 4  ;;  %p1973_p0 = pneg %p1953_p9  ;;  %s1965_s16 = int_to_ptr.vmem [resolvable:$true] %s294_s16 }
  0x41   : > { %s2272_s3 = scalar_select %p1973_p0, 1, 0 }
  0x43   : > { %s1962_s29 = scalar_lea.hbm %s2271_s1, %s1947_s21  ;;  %s1597_s18 = scalar_lea.hbm %s2271_s1, 256 }
  0x44   : > { %s1592_s20 = scalar_lea.hbm %s1962_s29, 128  ;;  %p1598_p6 = scmp.lt.u32.totalorder %s1962_s29, %s2271_s1 }
  0x45   : > { %p1593_p12 = scmp.ne.s32.totalorder %s1962_s29, %s1592_s20  ;;  %p1599_p10 = scmp.lt.u32.totalorder %s1597_s18, %s1592_s20 }
  0x46   : > { %p1601_p5 = scmp.lt.u32.totalorder %s1592_s20, %s1962_s29 }
  0x47   : > { %p1595_p1 = pnand %p1973_p0, %p1593_p12  ;;  %p1600_p3 = por %p1599_p10, %p1598_p6 }
  0x49   : > { %p1596_p2 = pneg %p1595_p1  ;;  %p1602_p13 = por %p1601_p5, %p1600_p3 }
  0x4b   : > { %p1603_p7 = pnand %p1602_p13, %p1596_p2 }
  0x4d   : > { %1606 = shalt.err (!%p1603_p7)
}
  0x4e   : > { %s1607_s14 = scalar_lea.vmem %s1965_s16, 128  ;;  %s1789_s15 = smov [#allocation6]  }
  0x4f   : > { %p1608_p12 = scmp.ne.s32.totalorder %s1965_s16, %s1607_s14  ;;  %s1612_s23 = sshll.u32 %s1789_s15, 4  ;;  %s1613_s23 = int_to_ptr.vmem [resolvable:$false] %s1612_s23 }
  0x50   : > { %s1614_s13 = scalar_lea.vmem %s1613_s23, 256  ;;  %p1615_p8 = scmp.lt.s32.totalorder %s1965_s16, %s1613_s23 }
  0x51   : > { %p1610_p1 = pnand %p1608_p12, %p1973_p0  ;;  %p1616_p11 = scmp.lt.s32.totalorder %s1614_s13, %s1607_s14 }
  0x53   : > { %p1611_p4 = pneg %p1610_p1  ;;  %p1617_p6 = por %p1616_p11, %p1615_p8 }
  0x55   : > { %p1618_p10 = pnand %p1617_p6, %p1611_p4 }
  0x57   : > { %1621 = shalt.err (!%p1618_p10)
}
  0x58   : > { %1480 = dma.hbm_to_vmem [thread:$0]  (!%p1953_p9), %s1962_s29, 128, %s1965_s16, %s1967_s17  }
  0x59   : > { %s1790_s18 = smov [#allocation11]   ;;  %s1622_s15 = scalar_lea.hbm %s2235_s4, 48 }
  0x5a   : > { %s245_s20 = sshll.u32 %s1790_s18, 4  ;;  %p1623_p8 = scmp.ne.s32.totalorder %s2235_s4, %s1622_s15  ;;  %s246_s20 = int_to_ptr.vmem [resolvable:$true] %s245_s20 }
  0x5b   : > { %p2273_p4 = scmp.ne.s32.totalorder %s2264_s12, 0  ;;  %p1629_p2 = scmp.lt.u32.totalorder %s1622_s15, %s2235_s4 }
  0x5d   : > { %p2274_p11 = pneg %p2273_p4 }
  0x5f   : > { %p1625_p13 = pnand %p1623_p8, %p2274_p11 }
  0x61   : > { %p1626_p7 = pneg %p1625_p13 }
  0x63   : > { %p1631_p3 = pnand %p1629_p2, %p1626_p7 }
  0x65   : > { %1634 = shalt.err (!%p1631_p3)
}
  0x66   : > { %s1635_s29 = scalar_lea.vmem %s246_s20, 48  ;;  %p2275_p12 = pmov %p2274_p11 }
  0x67   : > { %p1636_p5 = scmp.ne.s32.totalorder %s246_s20, %s1635_s29  ;;  %s1642_s1 = scalar_lea.vmem %s246_s20, 64 }
  0x68   : > { %p1643_p10 = scmp.lt.s32.totalorder %s246_s20, %s246_s20  ;;  %p1644_p9 = scmp.lt.s32.totalorder %s1642_s1, %s1635_s29 }
  0x69   : > { %p1638_p1 = pnand %p1636_p5, %p2275_p12 }
  0x6a   : > { %p1645_p0 = por %p1644_p9, %p1643_p10 }
  0x6b   : > { %p1639_p6 = pneg %p1638_p1 }
  0x6d   : > { %p1646_p8 = pnand %p1645_p0, %p1639_p6 }
  0x6f   : > { %1649 = shalt.err (!%p1646_p8)
}
  0x70   : > { %s1791_s27 = smov 16   ;;  %s1792_s16 = smov 1  }
  0x71   : > { %1473 = dma.hbm_to_vmem [thread:$0]  (!%p2273_p4), %s2235_s4, 48, %s246_s20, [#allocation10], %s1791_s27, %s1791_s27, %s1792_s16  }
  0x72   : > { %s2021_s14 = scalar_lea.hbm %s2231_s0, %s1947_s21  ;;  %s269_s13 = scalar_lea.vmem [#allocation3], %s1951_s22 }
  0x73   : > { %s276_s29 = sshll.u32 %s269_s13, 4  ;;  %s2276_s1 = sand.u32 1, %s1780_s26   ;;  %s277_s29 = int_to_ptr.vmem [resolvable:$true] %s276_s29 }
  0x74   : > { %s266_s8 = scalar_lea.sflag [#allocation4], %s2276_s1  ;;  %s1650_s24 = scalar_lea.hbm %s2021_s14, 128 }
  0x75   : > { %p1651_p9 = scmp.ne.s32.totalorder %s2021_s14, %s1650_s24  ;;  %p2277_p0 = scmp.ne.s32.totalorder %s2272_s3, 0 }
  0x76   : > { %s1655_s27 = scalar_lea.hbm %s2231_s0, 256  ;;  %p1656_p4 = scmp.lt.u32.totalorder %s2021_s14, %s2231_s0 }
  0x77   : > { %p1653_p11 = pnand %p1651_p9, %p2277_p0  ;;  %p1657_p7 = scmp.lt.u32.totalorder %s1655_s27, %s1650_s24 }
  0x78   : > { %p1659_p3 = scmp.lt.u32.totalorder %s1650_s24, %s2021_s14 }
  0x79   : > { %p1654_p13 = pneg %p1653_p11  ;;  %p1658_p2 = por %p1657_p7, %p1656_p4 }
  0x7b   : > { %p1660_p5 = por %p1659_p3, %p1658_p2 }
  0x7d   : > { %p1661_p12 = pnand %p1660_p5, %p1654_p13 }
  0x7f   : > { %1664 = shalt.err (!%p1661_p12)
}
  0x80   : > { %s1665_s10 = scalar_lea.vmem %s277_s29, 128  ;;  %s1793_s15 = smov [#allocation3]  }
  0x81   : > { %p1666_p1 = scmp.ne.s32.totalorder %s277_s29, %s1665_s10  ;;  %s1670_s23 = sshll.u32 %s1793_s15, 4  ;;  %s1671_s23 = int_to_ptr.vmem [resolvable:$false] %s1670_s23 }
  0x82   : > { %s1672_s13 = scalar_lea.vmem %s1671_s23, 256  ;;  %p1673_p8 = scmp.lt.s32.totalorder %s277_s29, %s1671_s23 }
  0x83   : > { %p1668_p6 = pnand %p1666_p1, %p2277_p0  ;;  %p1674_p9 = scmp.lt.s32.totalorder %s1672_s13, %s1665_s10 }
  0x85   : > { %p1669_p10 = pneg %p1668_p6  ;;  %p1675_p11 = por %p1674_p9, %p1673_p8 }
  0x87   : > { %p1676_p4 = pnand %p1675_p11, %p1669_p10 }
  0x89   : > { %1679 = shalt.err (!%p1676_p4)
}
  0x8a   : > { %p2278_p7 = scmp.ne.s32.totalorder %s2270_s11, 0  ;;  %s2047_s12 = scalar_lea.hbm %s2233_s2, %s1947_s21 }
  0x8b   : > { %s305_s20 = scalar_lea.vmem [#allocation8], %s1951_s22  ;;  %s1680_s16 = scalar_lea.hbm %s2047_s12, 128 }
  0x8c   : > { %1477 = dma.hbm_to_vmem [thread:$0]  (!%p2278_p7), %s2021_s14, 128, %s277_s29, %s266_s8  }
  0x8d   : > { %s312_s27 = sshll.u32 %s305_s20, 4  ;;  %p1681_p13 = scmp.ne.s32.totalorder %s2047_s12, %s1680_s16  ;;  %s313_s27 = int_to_ptr.vmem [resolvable:$true] %s312_s27 }
  0x8e   : > { %s1685_s8 = scalar_lea.hbm %s2233_s2, 256  ;;  %p1686_p5 = scmp.lt.u32.totalorder %s2047_s12, %s2233_s2 }
  0x8f   : > { %p1683_p2 = pnand %p1681_p13, %p2277_p0  ;;  %p1687_p12 = scmp.lt.u32.totalorder %s1685_s8, %s1680_s16 }
  0x90   : > { %p1689_p6 = scmp.lt.u32.totalorder %s1680_s16, %s2047_s12 }
  0x91   : > { %p1684_p3 = pneg %p1683_p2  ;;  %p1688_p1 = por %p1687_p12, %p1686_p5 }
  0x93   : > { %p1690_p10 = por %p1689_p6, %p1688_p1 }
  0x95   : > { %p1691_p8 = pnand %p1690_p10, %p1684_p3 }
  0x97   : > { %1694 = shalt.err (!%p1691_p8)
}
  0x98   : > { %s1695_s21 = scalar_lea.vmem %s313_s27, 128  ;;  %s1794_s22 = smov [#allocation8]  }
  0x99   : > { %p1696_p9 = scmp.ne.s32.totalorder %s313_s27, %s1695_s21  ;;  %s1700_s15 = sshll.u32 %s1794_s22, 4  ;;  %s1701_s15 = int_to_ptr.vmem [resolvable:$false] %s1700_s15 }
  0x9a   : > { %s1702_s23 = scalar_lea.vmem %s1701_s15, 256  ;;  %p1703_p13 = scmp.lt.s32.totalorder %s313_s27, %s1701_s15 }
  0x9b   : > { %p1698_p11 = pnand %p1696_p9, %p2277_p0  ;;  %p1704_p2 = scmp.lt.s32.totalorder %s1702_s23, %s1695_s21 }
  0x9d   : > { %p1699_p4 = pneg %p1698_p11  ;;  %p1705_p7 = por %p1704_p2, %p1703_p13 }
  0x9f   : > { %p1706_p5 = pnand %p1705_p7, %p1699_p4 }
  0xa1   : > { %1709 = shalt.err (!%p1706_p5)
}
  0xa2   : > { %p2279_p12 = scmp.ne.s32.totalorder %s2270_s11, 0  ;;  %p2280_p3 = scmp.ne.s32.totalorder %s2263_s9, 0 }
  0xa3   : > { %s2071_s3 = sand.u32 (!%p2280_p3), 1, %s1776_s25   ;;  %p2281_p0 = scmp.ne.s32.totalorder (!%p2280_p3), %s2260_s30, 0 }
  0xa4   : > { %1483 = dma.hbm_to_vmem [thread:$0]  (!%p2279_p12), %s2047_s12, 128, %s313_s27, %s1967_s17  }
  0xa5   : > { %321 = sbr.rel (%p2280_p3) target bundleno = 1638 (0x666), region = 48  ;;  %s2074_s13 = sshll.u32 (!%p2280_p3), %s2071_s3, 3 }
  0xa6   : > { %s324_s24 = scalar_lea.sflag (!%p2280_p3), [#allocation4], %s2071_s3  ;;  %s327_s1 = scalar_lea.vmem (!%p2280_p3), [#allocation3], %s2074_s13 }
  0xac   : > { %1755 = dma.done.wait (%p2281_p0), %s324_s24, 128  }
  0xad   : > { %1757 = vsyncadd (%p2281_p0), %s324_s24, 4294967168  ;;  %s332_s9 = sand.u32 1, %s1865_s28   ;;  %s336_s17 = scalar_lea.vmem [#allocation6], %s2074_s13 }
  0xae   : > { %s333_s11 = scalar_lea.sflag [#allocation7], %s332_s9 }
  0xaf   : > { %1759 = dma.done.wait (%p2281_p0), %s333_s11, 256  }
  0xb0   : > { %1761 = vsyncadd (%p2281_p0), %s333_s11, 4294967040  ;;  %s345_s12 = scalar_lea.vmem [#allocation8], %s2074_s13  ;;  %p2282_p7 = scmp.eq.s32.totalorder %s1865_s28, 0 }
  0xb2   : > { %1763 = dma.done.wait (%p2282_p7), [#allocation10], 816   ;;  %p2283_p1 = pmov %p2282_p7 }
  0xb3   : > { %v1795_v0 = vmov 0.0   ;;  %vm1796_vm0 = vmmov 0   ;;  %v1540_v1 = vld [vmem:[#allocation9 + $0x10] sm:$0xff]   ;;  %v1541_v2 = vld [vmem:[#allocation9] sm:$0xff]   ;;  %v1542_v3 = vld [vmem:[#allocation9 + $0x18] sm:$0xff]   ;;  %vm424_vm1 = vcmask 261120  }
  0xb4   : > { %1765 = vsyncadd (%p2283_p1), [#allocation10], 4294966480  ;;  %1379 = vmatprep.subr.bf16.mxu1 %v1795_v0  ;;  %1371 = vmatprep.subr.bf16.mxu0 %v1795_v0  ;;  %v1543_v4 = vld [vmem:[#allocation9 + $0x8] sm:$0xff]   ;;  %v395_v6 = vld [vmem:[%s327_s1] sm:$0xff]  ;;  %vm608_vm2 = vcmask 64512   ;;  %s1797_s30 = smov 112  }
  0xb5   : > { %1383 = vmatprep.mubr.msk.bf16.mxu1 %vm1796_vm0, %v1795_v0  ;;  %1375 = vmatprep.mubr.msk.bf16.mxu0 %vm1796_vm0, %v1795_v0  ;;  %v397_v5 = vld [vmem:[%s336_s17] sm:$0xff]  ;;  %v396_v8 = vpack.c.bf16 %v395_v6, %v395_v6  ;;  %v1313_v9 = vld [vmem:[#allocation11 + $0x1] ss:$0 sm:$0xff]  ;;  %v1309_v10 = vld [vmem:[#allocation11] ss:$0 sm:$0xff]  ;;  %s1798_s20 = smov 120  }
  0xb6   : > { %1380 = vmatpush3.bf16.msra.mxu1 %v1540_v1  ;;  %1372 = vmatpush3.bf16.msra.mxu0 %v1541_v2  ;;  %v398_v7 = vpack.c.bf16 %v397_v5, %v397_v5  ;;  %s1799_s27 = smov 104   ;;  %v1544_v25 = vld [vmem:[#allocation9 + $0x20] sm:$0xff]   ;;  %v1545_v26 = vld [vmem:[#allocation9 + $0x28] sm:$0xff]   ;;  %v399_v27 = vld [vmem:[%s345_s12] sm:$0xff]  ;;  %vm670_vm3 = vcmask 1043456   ;;  %vm715_vm4 = vcmask 60416  }
  0xb7   : > { %1381 = vmatprep.subr.bf16.mxu1 %v1795_v0  ;;  %1373 = vmatprep.subr.bf16.mxu0 %v1795_v0  ;;  %v400_v28 = vpack.c.bf16 %v399_v27, %v399_v27  ;;  %v1317_v43 = vld [vmem:[#allocation11 + $0x2] ss:$0 sm:$0xff]  ;;  %s1800_s16 = smov 8   ;;  %s1801_s29 = smov 16   ;;  %vm837_vm5 = vcmask 126016   ;;  %vm956_vm6 = vcmask 191616  }
  0xb8   : > { %s1802_s21 = smov 24   ;;  %vm1075_vm7 = vcmask 257216   ;;  %s1337_s23 = sshll.u32 %s1865_s28, 7 }
  0xb9   : > { %s393_s24 = scalar_lea.vmem [#allocation12], %s2074_s13  ;;  %s2186_s17 = scalar_lea.hbm %s2238_s7, %s1337_s23 }
  0xba   : > { %1382 = vmatpush3.bf16.msra.mxu1 %v1542_v3  ;;  %1374 = vmatpush3.bf16.msra.mxu0 %v1543_v4  ;;  %s1159_s1 = sshll.u32 %s393_s24, 4  ;;  %s1146_s28 = scalar_lea.sflag [#allocation5], %s2071_s3  ;;  %s2188_s1 = int_to_ptr.vmem [resolvable:$true] %s1159_s1 }
  0xbb   : > { %1395 = vmatprep.subr.bf16.mxu1 %v1795_v0  ;;  %1387 = vmatprep.subr.bf16.mxu0 %v1795_v0  ;;  %s1710_s13 = scalar_lea.vmem %s2188_s1, 128  ;;  %p2284_p10 = scmp.ne.s32.totalorder %s2269_s19, 0 }
  0xbc   : > { %p1711_p6 = scmp.ne.s32.totalorder %s2188_s1, %s1710_s13  ;;  %s1803_s12 = smov [#allocation12]  }
  0xbd   : > { %1384 = vmatmul.mubr.msk.bf16.vlgmr.msra.gmra.mrb[0].mxu1 %vm424_vm1, %v398_v7  ;;  %1376 = vmatmul.mubr.msk.bf16.vlgmr.msra.gmra.mrb[0].mxu0 %vm424_vm1, %v396_v8 }
  0xbe   : > { %1397 = vmatprep.mubr.msk.bf16.mxu1 %vm1796_vm0, %v1795_v0  ;;  %1391 = vmatprep.mubr.msk.bf16.mxu0 %vm1796_vm0, %v1795_v0  ;;  %p1712_p8 = pnand %p1711_p6, %p2284_p10 }
  0xbf   : > { %1388 = vmatpush3.bf16.msra.mxu0 %v1544_v25 }
  0xc0   : > { %1389 = vmatprep.subr.bf16.mxu0 %v1795_v0  ;;  %p1713_p9 = pneg %p1712_p8 }
  0xc3   : > { %1390 = vmatpush3.bf16.msra.mxu0 %v1545_v26 }
  0xc4   : > { %1401 = vmatprep.subr.bf16.mxu0 %v1795_v0 }
  0xc6   : > { %1392 = vmatmul.mubr.msk.bf16.vlgmr.msra.gmra.mrb[4].mxu0 %vm424_vm1, %v400_v28 }
  0xc7   : > { %1403 = vmatprep.mubr.msk.bf16.mxu0 %vm1796_vm0, %v1795_v0 }
 0x190   : > { %v531_v11 = vpop.f32.mrb[0].mxu1  ;;  %v462_v14 = vpop.f32.mrb[0].mxu0 }
 0x191   : > { %v532_v12 = vadd.f32 %v1313_v9, %v531_v11  ;;  %v1385_v13 = vpop.f32.mrb[1].mxu1  ;;  %v463_v15 = vadd.f32 %v1309_v10, %v462_v14  ;;  %v1377_v17 = vpop.f32.mrb[1].mxu0 }
 0x192   : > { %v534_v16 = vpop.f32.mrb[2].mxu1  ;;  %v465_v20 = vpop.f32.mrb[2].mxu0 }
 0x193   : > { %v606_v18 = vpack.c.bf16 %v532_v12, %v532_v12  ;;  %v1386_v19 = vpop.f32.mrb[3].mxu1  ;;  %v468_v21 = vmul.f32 0.35355338, %v463_v15  ;;  %v1378_v22 = vpop.f32.mrb[3].mxu0 }
 0x195   : > { %841 = vrot.lane.b32.xlu1 %v606_v18, %s1797_s30  ;;  %721 = vrot.lane.b32.xlu0 %v606_v18, %s1798_s20  ;;  %v613_v23 = vsel %vm608_vm2, %v606_v18, 0  ;;  %v605_v24 = vpack.c.bf16 %v468_v21, %v468_v21 }
 0x196   : > { %1396 = vmatpush3.bf16.xpose.msra.mxu1 %v613_v23 }
 0x197   : > { %1407 = vmatprep.subr.bf16.mxu1 %v1795_v0 }
 0x199   : > { %839 = vrot.lane.b32.xlu1 %v605_v24, %s1797_s30  ;;  %718 = vrot.lane.b32.xlu0 %v605_v24, %s1798_s20  ;;  %v599_v44 = vpop.f32.mrb[4].mxu0 }
 0x19a   : > { %v600_v45 = vadd.f32 %v1317_v43, %v599_v44  ;;  %v1393_v46 = vpop.f32.mrb[5].mxu0 }
 0x19b   : > { %v602_v47 = vpop.f32.mrb[6].mxu0 }
 0x19c   : > { %v607_v48 = vpack.c.bf16 %v600_v45, %v600_v45  ;;  %v1394_v49 = vpop.f32.mrb[7].mxu0 }
 0x19d   : > { %958 = vrot.lane.b32.xlu1 %v605_v24, %s1799_s27  ;;  %960 = vrot.lane.b32.xlu0 %v606_v18, %s1799_s27 }
 0x19e   : > { %1398 = vmatmul.mubr.msk.bf16.vlgmr.msra.gmra.mrb[4].mxu1 %vm608_vm2, %v605_v24  ;;  %v672_v50 = vsel %vm670_vm3, %v607_v48, 0 }
 0x19f   : > { %1409 = vmatprep.mubr.msk.bf16.mxu1 %vm1796_vm0, %v1795_v0  ;;  %1402 = vmatpush3.bf16.msra.mxu0 %v672_v50 }
 0x1a0   : > { %1413 = vmatprep.subr.bf16.mxu0 %v1795_v0 }
 0x207   : > { %v722_v29 = vpop.permute.xlu0 %721  ;;  %v842_v31 = vpop.permute.xlu1 %841 }
 0x208   : > { %v727_v30 = vsel %vm608_vm2, %v722_v29, 0  ;;  %v847_v33 = vsel %vm608_vm2, %v842_v31, 0 }
 0x209   : > { %1408 = vmatpush3.bf16.xpose.msra.mxu1 %v727_v30 }
 0x20a   : > { %1419 = vmatprep.subr.bf16.mxu1 %v1795_v0 }
 0x20b   : > { %v719_v32 = vpop.permute.xlu0 %718  ;;  %v840_v35 = vpop.permute.xlu1 %839 }
 0x20f   : > { %v961_v34 = vpop.permute.xlu0 %960  ;;  %v959_v37 = vpop.permute.xlu1 %958 }
 0x210   : > { %1410 = vmatmul.mubr.msk.bf16.vlgmr.msra.gmra.mrb[8].mxu1 %vm608_vm2, %v719_v32  ;;  %v966_v36 = vsel %vm608_vm2, %v961_v34, 0 }
 0x211   : > { %1420 = vmatpush3.bf16.xpose.msra.mxu1 %v847_v33  ;;  %1421 = vmatprep.mubr.msk.bf16.mxu1 %vm1796_vm0, %v1795_v0 }
 0x212   : > { %1431 = vmatprep.subr.bf16.mxu1 %v1795_v0 }
 0x218   : > { %1422 = vmatmul.mubr.msk.bf16.vlgmr.msra.gmra.mrb[12].mxu1 %vm608_vm2, %v840_v35 }
 0x219   : > { %1432 = vmatpush3.bf16.xpose.msra.mxu1 %v966_v36  ;;  %1433 = vmatprep.mubr.msk.bf16.mxu1 %vm1796_vm0, %v1795_v0 }
 0x21a   : > { %1443 = vmatprep.subr.bf16.mxu1 %v1795_v0 }
 0x220   : > { %1434 = vmatmul.mubr.msk.bf16.vlgmr.msra.gmra.mrb[16].mxu1 %vm608_vm2, %v959_v37 }
 0x221   : > { %1447 = vmatprep.mubr.msk.bf16.mxu1 %vm1796_vm0, %v1795_v0 }
 0x271   : > { %v649_v38 = vpop.f32.mrb[4].mxu1 }
 0x272   : > { %v1399_v39 = vpop.f32.mrb[5].mxu1  ;;  %v655_v40 = vsel %vm608_vm2, %v649_v38, -inf }
 0x273   : > { %656 = vmax.xlane.f32.xlu0 %v655_v40  ;;  %v652_v41 = vpop.f32.mrb[6].mxu1 }
 0x274   : > { %v1400_v42 = vpop.f32.mrb[7].mxu1 }
 0x2e3   : > { %v763_v51 = vpop.f32.mrb[8].mxu1 }
 0x2e4   : > { %v1411_v52 = vpop.f32.mrb[9].mxu1  ;;  %v769_v53 = vsel %vm608_vm2, %v763_v51, -inf }
 0x2e5   : > { %770 = vmax.xlane.f32.xlu1 %v769_v53  ;;  %v766_v54 = vpop.f32.mrb[10].mxu1 }
 0x2e6   : > { %v1412_v55 = vpop.f32.mrb[11].mxu1 }
 0x2e7   : > { %v1546_v55 = vld [vmem:[%s2236_s5] sm:$0xff]  }
 0x2e8   : > { %1444 = vmatpush3.bf16.msra.mxu1 %v1546_v55 }
 0x2e9   : > { %1445 = vmatprep.subr.bf16.mxu1 %v1795_v0 }
 0x2eb   : > { %v883_v56 = vpop.f32.mrb[12].mxu1 }
 0x2ec   : > { %v1423_v57 = vpop.f32.mrb[13].mxu1  ;;  %v889_v58 = vsel %vm608_vm2, %v883_v56, -inf }
 0x2ed   : > { %890 = vmax.xlane.f32.xlu0 %v889_v58  ;;  %v886_v59 = vpop.f32.mrb[14].mxu1  ;;  %v1547_v57 = vld [vmem:[%s2236_s5 + $0x8] sm:$0xff]  }
 0x2ee   : > { %v1424_v60 = vpop.f32.mrb[15].mxu1  ;;  %1446 = vmatpush3.bf16.msra.mxu1 %v1547_v57 }
 0x2f3   : > { %v1002_v61 = vpop.f32.mrb[16].mxu1 }
 0x2f4   : > { %v1435_v62 = vpop.f32.mrb[17].mxu1  ;;  %v1008_v63 = vsel %vm608_vm2, %v1002_v61, -inf }
 0x2f5   : > { %1009 = vmax.xlane.f32.xlu0 %v1008_v63  ;;  %v1005_v1 = vpop.f32.mrb[18].mxu1 }
 0x2f6   : > { %v1436_v2 = vpop.f32.mrb[19].mxu1 }
 0x300   : > { %v657_v3 = vpop.xlane.xlu0 %656 }
 0x301   : > { %v658_v4 = vsub.f32 %v649_v38, %v657_v3 }
 0x303   : > { %v659_v5 = vmul.f32 1.442695, %v658_v4 }
 0x305   : > { %1548 = vpow2.f32 %v659_v5 }
 0x30f   : > { %v1549_v6 = vpop.eup %1548 }
 0x310   : > { %v661_v7 = vsel %vm608_vm2, %v1549_v6, 0.0 }
 0x311   : > { %662 = vadd.xlane.f32.xlu1 %v661_v7  ;;  %v1332_v7 = vld [vmem:[%s2237_s6] ss:$0 sm:$0xff] }
 0x322   : > { %782 = vrot.lane.b32.xlu1 %v607_v48, %s1798_s20 }
 0x372   : > { %v771_v8 = vpop.xlane.xlu1 %770 }
 0x373   : > { %v772_v9 = vsub.f32 %v763_v51, %v771_v8 }
 0x375   : > { %v773_v10 = vmul.f32 1.442695, %v772_v9 }
 0x377   : > { %1550 = vpow2.f32 %v773_v10 }
 0x37a   : > { %v891_v11 = vpop.xlane.xlu0 %890 }
 0x37b   : > { %v892_v12 = vsub.f32 %v883_v56, %v891_v11 }
 0x37d   : > { %v893_v13 = vmul.f32 1.442695, %v892_v12 }
 0x37f   : > { %1552 = vpow2.f32 %v893_v13 }
 0x381   : > { %v1551_v14 = vpop.eup %1550 }
 0x382   : > { %v1010_v15 = vpop.xlane.xlu0 %1009  ;;  %v775_v16 = vsel %vm608_vm2, %v1551_v14, 0.0 }
 0x383   : > { %v1011_v17 = vsub.f32 %v1002_v61, %v1010_v15  ;;  %776 = vadd.xlane.f32.xlu0 %v775_v16 }
 0x385   : > { %v1012_v18 = vmul.f32 1.442695, %v1011_v17 }
 0x387   : > { %1554 = vpow2.f32 %v1012_v18 }
 0x389   : > { %v1553_v19 = vpop.eup %1552 }
 0x38a   : > { %v895_v20 = vsel %vm608_vm2, %v1553_v19, 0.0 }
 0x38b   : > { %896 = vadd.xlane.f32.xlu1 %v895_v20 }
 0x391   : > { %v1555_v21 = vpop.eup %1554 }
 0x392   : > { %v1014_v22 = vsel %vm608_vm2, %v1555_v21, 0.0 }
 0x393   : > { %1015 = vadd.xlane.f32.xlu0 %v1014_v22 }
 0x39c   : > { %1020 = vrot.lane.b32.xlu1 %v607_v48, %s1799_s27 }
 0x39e   : > { %v663_v23 = vpop.xlane.xlu1 %662 }
 0x39f   : > { %1556 = vrcp.f32 %v663_v23 }
 0x3a2   : > { %v783_v25 = vpop.permute.xlu1 %782 }
 0x3a3   : > { %v788_v28 = vsel %vm670_vm3, %v783_v25, 0 }
 0x3a9   : > { %v1557_v24 = vpop.eup %1556  ;;  %901 = vrot.lane.b32.xlu0 %v607_v48, %s1797_s30  ;;  %s1714_s30 = sshll.u32 %s1803_s12, 4  ;;  %s1715_s30 = int_to_ptr.vmem [resolvable:$false] %s1714_s30 }
 0x3aa   : > { %v665_v26 = vmul.f32 %v1557_v24, %v1549_v6  ;;  %s1716_s20 = scalar_lea.vmem %s1715_s30, 256  ;;  %p1717_p11 = scmp.lt.s32.totalorder %s2188_s1, %s1715_s30 }
 0x3ab   : > { %p1718_p4 = scmp.lt.s32.totalorder %s1716_s20, %s1710_s13 }
 0x3ac   : > { %v666_v27 = vpack.c.bf16 %v665_v26, %v665_v26 }
 0x3ad   : > { %p1719_p13 = por %p1718_p4, %p1717_p11 }
 0x3ae   : > { %1404 = vmatmul.mubr.msk.bf16.vlgmr.msra.gmra.mrb[8].mxu0 %vm608_vm2, %v666_v27 }
 0x3af   : > { %1414 = vmatpush3.bf16.msra.mxu0 %v788_v28  ;;  %1415 = vmatprep.mubr.msk.bf16.mxu0 %vm1796_vm0, %v1795_v0  ;;  %p1720_p2 = pnand %p1719_p13, %p1713_p9 }
 0x3b0   : > { %1425 = vmatprep.subr.bf16.mxu0 %v1795_v0 }
 0x410   : > { %v777_v29 = vpop.xlane.xlu0 %776 }
 0x411   : > { %1558 = vrcp.f32 %v777_v29 }
 0x418   : > { %v897_v30 = vpop.xlane.xlu1 %896 }
 0x419   : > { %1560 = vrcp.f32 %v897_v30 }
 0x41b   : > { %v1559_v31 = vpop.eup %1558 }
 0x41c   : > { %v779_v32 = vmul.f32 %v1559_v31, %v1551_v14  ;;  %v1021_v39 = vpop.permute.xlu1 %1020 }
 0x41d   : > { %v1026_v41 = vsel %vm670_vm3, %v1021_v39, 0 }
 0x41e   : > { %v780_v33 = vpack.c.bf16 %v779_v32, %v779_v32 }
 0x420   : > { %v1016_v34 = vpop.xlane.xlu0 %1015  ;;  %1416 = vmatmul.mubr.msk.bf16.vlgmr.msra.gmra.mrb[12].mxu0 %vm608_vm2, %v780_v33 }
 0x421   : > { %1562 = vrcp.f32 %v1016_v34  ;;  %1427 = vmatprep.mubr.msk.bf16.mxu0 %vm1796_vm0, %v1795_v0 }
 0x423   : > { %v1561_v35 = vpop.eup %1560 }
 0x424   : > { %v899_v36 = vmul.f32 %v1561_v35, %v1553_v19  ;;  %v902_v37 = vpop.permute.xlu0 %901 }
 0x425   : > { %v907_v38 = vsel %vm670_vm3, %v902_v37, 0 }
 0x426   : > { %1426 = vmatpush3.bf16.msra.mxu0 %v907_v38  ;;  %v900_v40 = vpack.c.bf16 %v899_v36, %v899_v36 }
 0x427   : > { %1437 = vmatprep.subr.bf16.mxu0 %v1795_v0 }
 0x429   : > { %1428 = vmatmul.mubr.msk.bf16.vlgmr.msra.gmra.mrb[16].mxu0 %vm608_vm2, %v900_v40 }
 0x42a   : > { %1438 = vmatpush3.bf16.msra.mxu0 %v1026_v41  ;;  %1439 = vmatprep.mubr.msk.bf16.mxu0 %vm1796_vm0, %v1795_v0 }
 0x42b   : > { %v1563_v42 = vpop.eup %1562 }
 0x42c   : > { %v1018_v43 = vmul.f32 %v1563_v42, %v1555_v21 }
 0x42e   : > { %v1019_v44 = vpack.c.bf16 %v1018_v43, %v1018_v43 }
 0x431   : > { %1440 = vmatmul.mubr.msk.bf16.vlgmr.msra.gmra.mrb[20].mxu0 %vm608_vm2, %v1019_v44 }
 0x481   : > { %v708_v45 = vpop.f32.mrb[8].mxu0 }
 0x482   : > { %v714_v46 = vpack.c.bf16 %v708_v45, %v708_v45  ;;  %v1405_v47 = vpop.f32.mrb[9].mxu0 }
 0x483   : > { %v711_v48 = vpop.f32.mrb[10].mxu0 }
 0x484   : > { %716 = vst.msk [vmem:[#allocation2] sm:$0xf] %vm715_vm4, %v714_v46  ;;  %v1406_v49 = vpop.f32.mrb[11].mxu0 }
 0x4f3   : > { %v824_v50 = vpop.f32.mrb[12].mxu0 }
 0x4f4   : > { %v1340_v51 = vpack.c.bf16 %v824_v50, %v824_v50  ;;  %v1417_v52 = vpop.f32.mrb[13].mxu0 }
 0x4f5   : > { %v827_v53 = vpop.f32.mrb[14].mxu0 }
 0x4f6   : > { %834 = vrot.lane.b32.xlu1 %v1340_v51, %s1800_s16  ;;  %v1418_v54 = vpop.f32.mrb[15].mxu0 }
 0x4fc   : > { %v943_v56 = vpop.f32.mrb[16].mxu0 }
 0x4fd   : > { %v1341_v58 = vpack.c.bf16 %v943_v56, %v943_v56  ;;  %v1429_v59 = vpop.f32.mrb[17].mxu0 }
 0x4fe   : > { %v946_v60 = vpop.f32.mrb[18].mxu0 }
 0x4ff   : > { %953 = vrot.lane.b32.xlu0 %v1341_v58, %s1801_s29  ;;  %v1430_v61 = vpop.f32.mrb[19].mxu0 }
 0x504   : > { %v1062_v62 = vpop.f32.mrb[20].mxu0 }
 0x505   : > { %v1342_v63 = vpack.c.bf16 %v1062_v62, %v1062_v62  ;;  %v1441_v1 = vpop.f32.mrb[21].mxu0 }
 0x506   : > { %v1065_v2 = vpop.f32.mrb[22].mxu0 }
 0x507   : > { %1072 = vrot.lane.b32.xlu1 %v1342_v63, %s1802_s21  ;;  %v1442_v3 = vpop.f32.mrb[23].mxu0 }
 0x568   : > { %v835_v4 = vpop.permute.xlu1 %834 }
 0x569   : > { %838 = vst.msk [vmem:[#allocation2] sm:$0xf] %vm837_vm5, %v835_v4 }
 0x571   : > { %v954_v5 = vpop.permute.xlu0 %953 }
 0x572   : > { %957 = vst.msk [vmem:[#allocation2] sm:$0xf] %vm956_vm6, %v954_v5 }
 0x579   : > { %v1073_v0 = vpop.permute.xlu1 %1072 }
 0x57a   : > { %1076 = vst.msk [vmem:[#allocation2] sm:$0xf] %vm1075_vm7, %v1073_v0 }
 0x581   : > { %v1077_v6 = vld [vmem:[#allocation2] sm:$0xf] }
 0x582   : > { %1448 = vmatmul.mubr.msk.bf16.vlgmr.msra.gmra.mrb[20].mxu1 %vm424_vm1, %v1077_v6 }
 0x655   : > { %v1138_v8 = vpop.f32.mrb[20].mxu1 }
 0x656   : > { %v1139_v9 = vadd.f32 %v1332_v7, %v1138_v8  ;;  %v1449_v10 = vpop.f32.mrb[21].mxu1 }
 0x657   : > { %v1141_v11 = vpop.f32.mrb[22].mxu1 }
 0x658   : > { %v1450_v12 = vpop.f32.mrb[23].mxu1  ;;  %1144 = vst.msk [vmem:[%s393_s24] sm:$0xff] %vm424_vm1, %v1139_v9 }
 0x659   : > { %1723 = shalt.err (!%p1720_p2)
}
 0x65a   : > { %s1724_s3 = scalar_lea.hbm %s2186_s17, 128  ;;  %s1728_s18 = scalar_lea.hbm %s2238_s7, 256 }
 0x65b   : > { %p1725_p5 = scmp.ne.s32.totalorder %s2186_s17, %s1724_s3  ;;  %p1729_p0 = scmp.lt.u32.totalorder %s2186_s17, %s2238_s7 }
 0x65c   : > { %p1730_p7 = scmp.lt.u32.totalorder %s1728_s18, %s1724_s3  ;;  %p1732_p6 = scmp.lt.u32.totalorder %s1724_s3, %s2186_s17 }
 0x65d   : > { %p1726_p12 = pnand %p1725_p5, %p2284_p10 }
 0x65e   : > { %p1731_p1 = por %p1730_p7, %p1729_p0 }
 0x65f   : > { %p1727_p3 = pneg %p1726_p12 }
 0x660   : > { %p1733_p8 = por %p1732_p6, %p1731_p1 }
 0x662   : > { %p1734_p9 = pnand %p1733_p8, %p1727_p3 }
 0x664   : > { %1737 = shalt.err (!%p1734_p9)
}
 0x665   : > { %1465 = dma.vmem_to_hbm [thread:$0]  (%p2284_p10), %s2188_s1, 128, %s2186_s17, %s1146_s28  }
 0x666 PF: > { %s2285_s14 = sld [smem:[#allocation17_spill]]  ;;  %s2286_s29 = sld [smem:[#allocation19_spill]] }
 0x667   : > { %s2287_s21 = sld [smem:[#allocation18_spill]] }
 0x66c   : > { %s1171_s22 = sand.u32 1, %s2285_s14   ;;  %p2288_p11 = scmp.ne.s32.totalorder %s2286_s29, 0 }
 0x66d   : > { %p2289_p4 = scmp.ge.s32.totalorder %s2287_s21, 2  ;;  %s1172_s15 = scalar_lea.sflag [#allocation5], %s1171_s22 }
 0x66f   : > { %p1485_p13 = pnand %p2289_p4, %p2288_p11 }
 0x671   : > { %1767 = dma.done.wait (!%p1485_p13), %s1172_s15, 128  }
 0x672   : > { %1769 = vsyncadd (!%p1485_p13), %s1172_s15, 4294967168  ;;  %s2290_s27 = sld [smem:[#allocation20_spill]]  ;;  %s2291_s23 = sld [smem:[#allocation21_spill]] }
 0x673   : > { %s2292_s24 = smov %s1776_s25  ;;  %s2293_s25 = smov %s1780_s26 }
 0x678   : > { %p24_p2 = scmp.ge.s32.totalorder %s2290_s27, 4   ;;  %s2294_s26 = smov %s2291_s23 }
 0x67a   :  { %26 = sbr.rel (!%p24_p2) target bundleno = 11 (0xb), region = 129 }
 0x681   :  { %1177 = vsyncpa [#allocation4], 1 }
 0x682   :  { %1179 = vsyncpa [#allocation4 + $0x1], 1 }
 0x683   :  { %1180 = vsyncpa [#allocation7], 1 }
 0x684   :  { %1182 = vsyncpa [#allocation7 + $0x1], 1 }
 0x685   :  { %1183 = vsyncpa [#allocation10], 1 }
 0x686   :  { %1184 = vsyncpa [#allocation5], 1 }
 0x687   :  { %1186 = vsyncpa [#allocation5 + $0x1], 1 }

</bundles_post_ra>
